<compile_context>
chip_gen: v6e
topology: v6e:2x2x1
jax: 0.10.0
libtpu: 0.0.40
codegen_flags: <defaults>
</compile_context>

<pallas_src>
import jax
import jax.numpy as jnp
from jax import lax
from jax.experimental import pallas as pl
from jax.experimental.pallas import tpu as pltpu


def _round_up(x, m):
    return ((x + m - 1) // m) * m


def cbow_kernel(ctx_ref, emb_ref, projw_ref, projb_ref, out_ref):
    """One grid step j produces out[:, j*TV:(j+1)*TV].

    ctx_ref   : SMEM [Bp, W] int32   (scalar-prefetch)
    emb_ref   : VMEM [Vp, Ep] f32    (constant index_map -> resident, DMA'd once)
    projw_ref : VMEM [TV, Ep]        (per-step weight tile, nn.Linear layout)
    projb_ref : VMEM [1, TV] f32
    out_ref   : VMEM [Bp, TV] f32
    """
    Bp, W = ctx_ref.shape

    # Embedding gather + AvgPool1d(W): B*W dynamic row loads, summed in f32.
    # Recomputed per grid step (cheap: B*W rows of width Ep) so the vocab grid
    # axis can stay "parallel" with no cross-step scratch dependence.
    rows = []
    for b in range(Bp):                       # static loops (Bp, W are small)
        acc = emb_ref[pl.ds(ctx_ref[b, 0], 1), :]
        for w in range(1, W):
            acc = acc + emb_ref[pl.ds(ctx_ref[b, w], 1), :]
        rows.append(acc)
    ctx_emb = jnp.concatenate(rows, axis=0) * (1.0 / W)   # [Bp, Ep] f32

    # nn.Linear: y = x @ W.T + b, computed by contracting on E so the weight
    # tile keeps its stored [V, E] layout (no host transpose of proj_w).
    w_tile = projw_ref[...]                               # [TV, Ep]
    pred = lax.dot_general(
        ctx_emb.astype(w_tile.dtype), w_tile,
        dimension_numbers=(((1,), (1,)), ((), ())),
        preferred_element_type=jnp.float32)               # [Bp, TV] f32
    out_ref[...] = pred + projb_ref[...]                  # bias add in f32


def cbow_forward(context, emb_table, proj_w, proj_b, *,
                 matmul_dtype=jnp.float32):
    """context: [B, W] int; emb_table: [V, E]; proj_w: [V, E]; proj_b: [V]."""
    B, W = context.shape
    V, E = emb_table.shape

    Bp = _round_up(B, 8)       # f32 sublane alignment
    Vp = _round_up(V, 128)     # lane alignment (vocab axis)
    Ep = _round_up(E, 128)     # lane alignment (embedding axis)
    # Vocab tile: multiple of 128 for lane-dense stores; capped so two
    # double-buffered (TV, Ep) weight tiles stay far below the v7x 64 MiB VMEM
    # (no explicit vmem_limit_bytes needed at these tile sizes).
    TV = 512 if Vp % 512 == 0 else (256 if Vp % 256 == 0 else 128)

    ctx_p = jnp.pad(context.astype(jnp.int32), ((0, Bp - B), (0, 0)))
    emb_p = jnp.pad(emb_table.astype(jnp.float32), ((0, Vp - V), (0, Ep - E)))
    # In production cast/pad the weight once at init, not on every forward.
    w_p = jnp.pad(proj_w, ((0, Vp - V), (0, Ep - E))).astype(matmul_dtype)
    b_p = jnp.pad(proj_b.astype(jnp.float32), (0, Vp - V)).reshape(1, Vp)

    out = pl.pallas_call(
        cbow_kernel,
        out_shape=jax.ShapeDtypeStruct((Bp, Vp), jnp.float32),
        grid_spec=pltpu.PrefetchScalarGridSpec(
            num_scalar_prefetch=1,                 # context -> SMEM
            grid=(Vp // TV,),
            in_specs=[
                pl.BlockSpec((Vp, Ep), lambda j, ctx: (0, 0)),   # emb (resident)
                pl.BlockSpec((TV, Ep), lambda j, ctx: (j, 0)),   # weight tile
                pl.BlockSpec((1, TV), lambda j, ctx: (0, j)),    # bias tile
            ],
            out_specs=pl.BlockSpec((Bp, TV), lambda j, ctx: (0, j)),
        ),
        compiler_params=pltpu.CompilerParams(
            dimension_semantics=("parallel",),     # shards across v7x's 2 TCs
        ),
    )(ctx_p, emb_p, w_p, b_p)

    out = out[:B, :V]
    # PyTorch forward ends with .squeeze(): drop the batch dim when B == 1.
    return jnp.squeeze(out, axis=0) if B == 1 else out


def cbow_reference(context, emb_table, proj_w, proj_b):
    emb = emb_table[context]                  # [B, W, E]
    pooled = emb.mean(axis=1)                 # [B, E]   (AvgPool1d over window)
    pred = pooled @ proj_w.T + proj_b         # [B, V]
    return jnp.squeeze(pred, axis=0) if context.shape[0] == 1 else pred


if __name__ == "__main__":
    vocab_size = 8
    embedding_size = 4
    window_length = 4

    key = jax.random.PRNGKey(0)
    k_emb, k_w, k_b = jax.random.split(key, 3)

    # Deterministic parameter init (shapes match nn.Embedding / nn.Linear).
    emb_table = jax.random.normal(k_emb, (vocab_size, embedding_size), jnp.float32)
    bound = 1.0 / float(embedding_size) ** 0.5
    proj_w = jax.random.uniform(k_w, (vocab_size, embedding_size), jnp.float32,
                                -bound, bound)
    proj_b = jax.random.uniform(k_b, (vocab_size,), jnp.float32, -bound, bound)

    # Case 1: the original spec's context (batch of 1), exact f32 matmul.
    ctx1 = jnp.array([[1, 2, 4, 5]], dtype=jnp.int32)
    pred1 = jax.block_until_ready(
        cbow_forward(ctx1, emb_table, proj_w, proj_b, matmul_dtype=jnp.float32))
    ref1 = cbow_reference(ctx1, emb_table, proj_w, proj_b)
    assert pred1.shape == (vocab_size,), pred1.shape
    assert jnp.allclose(pred1, ref1, atol=1e-5, rtol=1e-5), (pred1, ref1)

    # Case 2: batched context, bf16 matmul operands (halves weight streaming on
    # v6e/v7x); accumulation and bias add stay f32.
    ctx2 = jnp.array([[1, 2, 4, 5],
                      [0, 3, 6, 7]], dtype=jnp.int32)
    pred2 = jax.block_until_ready(
        cbow_forward(ctx2, emb_table, proj_w, proj_b, matmul_dtype=jnp.bfloat16))
    ref2 = cbow_reference(ctx2, emb_table, proj_w, proj_b)
    assert pred2.shape == (2, vocab_size), pred2.shape
    assert jnp.allclose(pred2, ref2, atol=3e-2, rtol=3e-2), (pred2, ref2)

    print("KERNEL_OK")
</pallas_src>

<mosaic_0001>
module attributes {stable_mosaic.version = 11 : i64} {
  func.func @cbow_kernel(%arg0: i32, %arg1: memref<8x4xi32, #tpu.memory_space<smem>>, %arg2: memref<128x128xf32, #tpu.memory_space<vmem>>, %arg3: memref<128x128xf32, #tpu.memory_space<vmem>>, %arg4: memref<1x128xf32, #tpu.memory_space<vmem>>, %arg5: memref<8x128xf32, #tpu.memory_space<vmem>>) attributes {dimension_semantics = [#tpu.dimension_semantics<parallel>], iteration_bounds = array<i64: 1>, scalar_prefetch = 1 : i64, scratch_operands = 0 : i64, tpu.core_type = #tpu.core_type<tc>, window_params = [{pipeline_mode = #tpu.pipeline_mode<synchronous>, transform_indices = @transform_0, window_bounds = array<i64: 128, 128>}, {transform_indices = @transform_1, window_bounds = array<i64: 128, 128>}, {transform_indices = @transform_2, window_bounds = array<i64: 1, 128>}, {transform_indices = @transform_3, window_bounds = array<i64: 8, 128>}]} {
    %c0 = arith.constant 0 : index
    %c0_0 = arith.constant 0 : index
    %0 = memref.load %arg1[%c0, %c0_0] : memref<8x4xi32, #tpu.memory_space<smem>>
    %1 = arith.index_cast %0 : i32 to index
    %c0_1 = arith.constant 0 : index
    %2 = vector.load %arg2[%1, %c0_1] : memref<128x128xf32, #tpu.memory_space<vmem>>, vector<1x128xf32>
    %c0_2 = arith.constant 0 : index
    %c1 = arith.constant 1 : index
    %3 = memref.load %arg1[%c0_2, %c1] : memref<8x4xi32, #tpu.memory_space<smem>>
    %4 = arith.index_cast %3 : i32 to index
    %c0_3 = arith.constant 0 : index
    %5 = vector.load %arg2[%4, %c0_3] : memref<128x128xf32, #tpu.memory_space<vmem>>, vector<1x128xf32>
    %6 = arith.addf %2, %5 : vector<1x128xf32>
    %c0_4 = arith.constant 0 : index
    %c2 = arith.constant 2 : index
    %7 = memref.load %arg1[%c0_4, %c2] : memref<8x4xi32, #tpu.memory_space<smem>>
    %8 = arith.index_cast %7 : i32 to index
    %c0_5 = arith.constant 0 : index
    %9 = vector.load %arg2[%8, %c0_5] : memref<128x128xf32, #tpu.memory_space<vmem>>, vector<1x128xf32>
    %10 = arith.addf %6, %9 : vector<1x128xf32>
    %c0_6 = arith.constant 0 : index
    %c3 = arith.constant 3 : index
    %11 = memref.load %arg1[%c0_6, %c3] : memref<8x4xi32, #tpu.memory_space<smem>>
    %12 = arith.index_cast %11 : i32 to index
    %c0_7 = arith.constant 0 : index
    %13 = vector.load %arg2[%12, %c0_7] : memref<128x128xf32, #tpu.memory_space<vmem>>, vector<1x128xf32>
    %14 = arith.addf %10, %13 : vector<1x128xf32>
    %c1_8 = arith.constant 1 : index
    %c0_9 = arith.constant 0 : index
    %15 = memref.load %arg1[%c1_8, %c0_9] : memref<8x4xi32, #tpu.memory_space<smem>>
    %16 = arith.index_cast %15 : i32 to index
    %c0_10 = arith.constant 0 : index
    %17 = vector.load %arg2[%16, %c0_10] : memref<128x128xf32, #tpu.memory_space<vmem>>, vector<1x128xf32>
    %c1_11 = arith.constant 1 : index
    %c1_12 = arith.constant 1 : index
    %18 = memref.load %arg1[%c1_11, %c1_12] : memref<8x4xi32, #tpu.memory_space<smem>>
    %19 = arith.index_cast %18 : i32 to index
    %c0_13 = arith.constant 0 : index
    %20 = vector.load %arg2[%19, %c0_13] : memref<128x128xf32, #tpu.memory_space<vmem>>, vector<1x128xf32>
    %21 = arith.addf %17, %20 : vector<1x128xf32>
    %c1_14 = arith.constant 1 : index
    %c2_15 = arith.constant 2 : index
    %22 = memref.load %arg1[%c1_14, %c2_15] : memref<8x4xi32, #tpu.memory_space<smem>>
    %23 = arith.index_cast %22 : i32 to index
    %c0_16 = arith.constant 0 : index
    %24 = vector.load %arg2[%23, %c0_16] : memref<128x128xf32, #tpu.memory_space<vmem>>, vector<1x128xf32>
    %25 = arith.addf %21, %24 : vector<1x128xf32>
    %c1_17 = arith.constant 1 : index
    %c3_18 = arith.constant 3 : index
    %26 = memref.load %arg1[%c1_17, %c3_18] : memref<8x4xi32, #tpu.memory_space<smem>>
    %27 = arith.index_cast %26 : i32 to index
    %c0_19 = arith.constant 0 : index
    %28 = vector.load %arg2[%27, %c0_19] : memref<128x128xf32, #tpu.memory_space<vmem>>, vector<1x128xf32>
    %29 = arith.addf %25, %28 : vector<1x128xf32>
    %c2_20 = arith.constant 2 : index
    %c0_21 = arith.constant 0 : index
    %30 = memref.load %arg1[%c2_20, %c0_21] : memref<8x4xi32, #tpu.memory_space<smem>>
    %31 = arith.index_cast %30 : i32 to index
    %c0_22 = arith.constant 0 : index
    %32 = vector.load %arg2[%31, %c0_22] : memref<128x128xf32, #tpu.memory_space<vmem>>, vector<1x128xf32>
    %c2_23 = arith.constant 2 : index
    %c1_24 = arith.constant 1 : index
    %33 = memref.load %arg1[%c2_23, %c1_24] : memref<8x4xi32, #tpu.memory_space<smem>>
    %34 = arith.index_cast %33 : i32 to index
    %c0_25 = arith.constant 0 : index
    %35 = vector.load %arg2[%34, %c0_25] : memref<128x128xf32, #tpu.memory_space<vmem>>, vector<1x128xf32>
    %36 = arith.addf %32, %35 : vector<1x128xf32>
    %c2_26 = arith.constant 2 : index
    %c2_27 = arith.constant 2 : index
    %37 = memref.load %arg1[%c2_26, %c2_27] : memref<8x4xi32, #tpu.memory_space<smem>>
    %38 = arith.index_cast %37 : i32 to index
    %c0_28 = arith.constant 0 : index
    %39 = vector.load %arg2[%38, %c0_28] : memref<128x128xf32, #tpu.memory_space<vmem>>, vector<1x128xf32>
    %40 = arith.addf %36, %39 : vector<1x128xf32>
    %c2_29 = arith.constant 2 : index
    %c3_30 = arith.constant 3 : index
    %41 = memref.load %arg1[%c2_29, %c3_30] : memref<8x4xi32, #tpu.memory_space<smem>>
    %42 = arith.index_cast %41 : i32 to index
    %c0_31 = arith.constant 0 : index
    %43 = vector.load %arg2[%42, %c0_31] : memref<128x128xf32, #tpu.memory_space<vmem>>, vector<1x128xf32>
    %44 = arith.addf %40, %43 : vector<1x128xf32>
    %c3_32 = arith.constant 3 : index
    %c0_33 = arith.constant 0 : index
    %45 = memref.load %arg1[%c3_32, %c0_33] : memref<8x4xi32, #tpu.memory_space<smem>>
    %46 = arith.index_cast %45 : i32 to index
    %c0_34 = arith.constant 0 : index
    %47 = vector.load %arg2[%46, %c0_34] : memref<128x128xf32, #tpu.memory_space<vmem>>, vector<1x128xf32>
    %c3_35 = arith.constant 3 : index
    %c1_36 = arith.constant 1 : index
    %48 = memref.load %arg1[%c3_35, %c1_36] : memref<8x4xi32, #tpu.memory_space<smem>>
    %49 = arith.index_cast %48 : i32 to index
    %c0_37 = arith.constant 0 : index
    %50 = vector.load %arg2[%49, %c0_37] : memref<128x128xf32, #tpu.memory_space<vmem>>, vector<1x128xf32>
    %51 = arith.addf %47, %50 : vector<1x128xf32>
    %c3_38 = arith.constant 3 : index
    %c2_39 = arith.constant 2 : index
    %52 = memref.load %arg1[%c3_38, %c2_39] : memref<8x4xi32, #tpu.memory_space<smem>>
    %53 = arith.index_cast %52 : i32 to index
    %c0_40 = arith.constant 0 : index
    %54 = vector.load %arg2[%53, %c0_40] : memref<128x128xf32, #tpu.memory_space<vmem>>, vector<1x128xf32>
    %55 = arith.addf %51, %54 : vector<1x128xf32>
    %c3_41 = arith.constant 3 : index
    %c3_42 = arith.constant 3 : index
    %56 = memref.load %arg1[%c3_41, %c3_42] : memref<8x4xi32, #tpu.memory_space<smem>>
    %57 = arith.index_cast %56 : i32 to index
    %c0_43 = arith.constant 0 : index
    %58 = vector.load %arg2[%57, %c0_43] : memref<128x128xf32, #tpu.memory_space<vmem>>, vector<1x128xf32>
    %59 = arith.addf %55, %58 : vector<1x128xf32>
    %c4 = arith.constant 4 : index
    %c0_44 = arith.constant 0 : index
    %60 = memref.load %arg1[%c4, %c0_44] : memref<8x4xi32, #tpu.memory_space<smem>>
    %61 = arith.index_cast %60 : i32 to index
    %c0_45 = arith.constant 0 : index
    %62 = vector.load %arg2[%61, %c0_45] : memref<128x128xf32, #tpu.memory_space<vmem>>, vector<1x128xf32>
    %c4_46 = arith.constant 4 : index
    %c1_47 = arith.constant 1 : index
    %63 = memref.load %arg1[%c4_46, %c1_47] : memref<8x4xi32, #tpu.memory_space<smem>>
    %64 = arith.index_cast %63 : i32 to index
    %c0_48 = arith.constant 0 : index
    %65 = vector.load %arg2[%64, %c0_48] : memref<128x128xf32, #tpu.memory_space<vmem>>, vector<1x128xf32>
    %66 = arith.addf %62, %65 : vector<1x128xf32>
    %c4_49 = arith.constant 4 : index
    %c2_50 = arith.constant 2 : index
    %67 = memref.load %arg1[%c4_49, %c2_50] : memref<8x4xi32, #tpu.memory_space<smem>>
    %68 = arith.index_cast %67 : i32 to index
    %c0_51 = arith.constant 0 : index
    %69 = vector.load %arg2[%68, %c0_51] : memref<128x128xf32, #tpu.memory_space<vmem>>, vector<1x128xf32>
    %70 = arith.addf %66, %69 : vector<1x128xf32>
    %c4_52 = arith.constant 4 : index
    %c3_53 = arith.constant 3 : index
    %71 = memref.load %arg1[%c4_52, %c3_53] : memref<8x4xi32, #tpu.memory_space<smem>>
    %72 = arith.index_cast %71 : i32 to index
    %c0_54 = arith.constant 0 : index
    %73 = vector.load %arg2[%72, %c0_54] : memref<128x128xf32, #tpu.memory_space<vmem>>, vector<1x128xf32>
    %74 = arith.addf %70, %73 : vector<1x128xf32>
    %c5 = arith.constant 5 : index
    %c0_55 = arith.constant 0 : index
    %75 = memref.load %arg1[%c5, %c0_55] : memref<8x4xi32, #tpu.memory_space<smem>>
    %76 = arith.index_cast %75 : i32 to index
    %c0_56 = arith.constant 0 : index
    %77 = vector.load %arg2[%76, %c0_56] : memref<128x128xf32, #tpu.memory_space<vmem>>, vector<1x128xf32>
    %c5_57 = arith.constant 5 : index
    %c1_58 = arith.constant 1 : index
    %78 = memref.load %arg1[%c5_57, %c1_58] : memref<8x4xi32, #tpu.memory_space<smem>>
    %79 = arith.index_cast %78 : i32 to index
    %c0_59 = arith.constant 0 : index
    %80 = vector.load %arg2[%79, %c0_59] : memref<128x128xf32, #tpu.memory_space<vmem>>, vector<1x128xf32>
    %81 = arith.addf %77, %80 : vector<1x128xf32>
    %c5_60 = arith.constant 5 : index
    %c2_61 = arith.constant 2 : index
    %82 = memref.load %arg1[%c5_60, %c2_61] : memref<8x4xi32, #tpu.memory_space<smem>>
    %83 = arith.index_cast %82 : i32 to index
    %c0_62 = arith.constant 0 : index
    %84 = vector.load %arg2[%83, %c0_62] : memref<128x128xf32, #tpu.memory_space<vmem>>, vector<1x128xf32>
    %85 = arith.addf %81, %84 : vector<1x128xf32>
    %c5_63 = arith.constant 5 : index
    %c3_64 = arith.constant 3 : index
    %86 = memref.load %arg1[%c5_63, %c3_64] : memref<8x4xi32, #tpu.memory_space<smem>>
    %87 = arith.index_cast %86 : i32 to index
    %c0_65 = arith.constant 0 : index
    %88 = vector.load %arg2[%87, %c0_65] : memref<128x128xf32, #tpu.memory_space<vmem>>, vector<1x128xf32>
    %89 = arith.addf %85, %88 : vector<1x128xf32>
    %c6 = arith.constant 6 : index
    %c0_66 = arith.constant 0 : index
    %90 = memref.load %arg1[%c6, %c0_66] : memref<8x4xi32, #tpu.memory_space<smem>>
    %91 = arith.index_cast %90 : i32 to index
    %c0_67 = arith.constant 0 : index
    %92 = vector.load %arg2[%91, %c0_67] : memref<128x128xf32, #tpu.memory_space<vmem>>, vector<1x128xf32>
    %c6_68 = arith.constant 6 : index
    %c1_69 = arith.constant 1 : index
    %93 = memref.load %arg1[%c6_68, %c1_69] : memref<8x4xi32, #tpu.memory_space<smem>>
    %94 = arith.index_cast %93 : i32 to index
    %c0_70 = arith.constant 0 : index
    %95 = vector.load %arg2[%94, %c0_70] : memref<128x128xf32, #tpu.memory_space<vmem>>, vector<1x128xf32>
    %96 = arith.addf %92, %95 : vector<1x128xf32>
    %c6_71 = arith.constant 6 : index
    %c2_72 = arith.constant 2 : index
    %97 = memref.load %arg1[%c6_71, %c2_72] : memref<8x4xi32, #tpu.memory_space<smem>>
    %98 = arith.index_cast %97 : i32 to index
    %c0_73 = arith.constant 0 : index
    %99 = vector.load %arg2[%98, %c0_73] : memref<128x128xf32, #tpu.memory_space<vmem>>, vector<1x128xf32>
    %100 = arith.addf %96, %99 : vector<1x128xf32>
    %c6_74 = arith.constant 6 : index
    %c3_75 = arith.constant 3 : index
    %101 = memref.load %arg1[%c6_74, %c3_75] : memref<8x4xi32, #tpu.memory_space<smem>>
    %102 = arith.index_cast %101 : i32 to index
    %c0_76 = arith.constant 0 : index
    %103 = vector.load %arg2[%102, %c0_76] : memref<128x128xf32, #tpu.memory_space<vmem>>, vector<1x128xf32>
    %104 = arith.addf %100, %103 : vector<1x128xf32>
    %c7 = arith.constant 7 : index
    %c0_77 = arith.constant 0 : index
    %105 = memref.load %arg1[%c7, %c0_77] : memref<8x4xi32, #tpu.memory_space<smem>>
    %106 = arith.index_cast %105 : i32 to index
    %c0_78 = arith.constant 0 : index
    %107 = vector.load %arg2[%106, %c0_78] : memref<128x128xf32, #tpu.memory_space<vmem>>, vector<1x128xf32>
    %c7_79 = arith.constant 7 : index
    %c1_80 = arith.constant 1 : index
    %108 = memref.load %arg1[%c7_79, %c1_80] : memref<8x4xi32, #tpu.memory_space<smem>>
    %109 = arith.index_cast %108 : i32 to index
    %c0_81 = arith.constant 0 : index
    %110 = vector.load %arg2[%109, %c0_81] : memref<128x128xf32, #tpu.memory_space<vmem>>, vector<1x128xf32>
    %111 = arith.addf %107, %110 : vector<1x128xf32>
    %c7_82 = arith.constant 7 : index
    %c2_83 = arith.constant 2 : index
    %112 = memref.load %arg1[%c7_82, %c2_83] : memref<8x4xi32, #tpu.memory_space<smem>>
    %113 = arith.index_cast %112 : i32 to index
    %c0_84 = arith.constant 0 : index
    %114 = vector.load %arg2[%113, %c0_84] : memref<128x128xf32, #tpu.memory_space<vmem>>, vector<1x128xf32>
    %115 = arith.addf %111, %114 : vector<1x128xf32>
    %c7_85 = arith.constant 7 : index
    %c3_86 = arith.constant 3 : index
    %116 = memref.load %arg1[%c7_85, %c3_86] : memref<8x4xi32, #tpu.memory_space<smem>>
    %117 = arith.index_cast %116 : i32 to index
    %c0_87 = arith.constant 0 : index
    %118 = vector.load %arg2[%117, %c0_87] : memref<128x128xf32, #tpu.memory_space<vmem>>, vector<1x128xf32>
    %119 = arith.addf %115, %118 : vector<1x128xf32>
    %120 = tpu.concatenate %14, %29, %44, %59, %74, %89, %104, %119 in 0 : vector<1x128xf32>, vector<1x128xf32>, vector<1x128xf32>, vector<1x128xf32>, vector<1x128xf32>, vector<1x128xf32>, vector<1x128xf32>, vector<1x128xf32> -> vector<8x128xf32>
    %cst = arith.constant 2.500000e-01 : f32
    %121 = vector.broadcast %cst : f32 to vector<8x128xf32>
    %122 = arith.mulf %120, %121 : vector<8x128xf32>
    %c0_88 = arith.constant 0 : index
    %c0_89 = arith.constant 0 : index
    %123 = vector.load %arg3[%c0_88, %c0_89] : memref<128x128xf32, #tpu.memory_space<vmem>>, vector<128x128xf32>
    %cst_90 = arith.constant dense<0.000000e+00> : vector<8x128xf32>
    %124 = tpu.matmul %122, %123, %cst_90 {dimension_numbers = #tpu.dot_dimension_numbers<[1], [1], [0], [0], [0, 0, 1, 0], [], []>} : vector<8x128xf32>, vector<128x128xf32>, vector<8x128xf32> -> vector<8x128xf32>
    %c0_91 = arith.constant 0 : index
    %c0_92 = arith.constant 0 : index
    %125 = vector.load %arg4[%c0_91, %c0_92] : memref<1x128xf32, #tpu.memory_space<vmem>>, vector<1x128xf32>
    %126 = vector.broadcast %125 : vector<1x128xf32> to vector<8x128xf32>
    %127 = arith.addf %124, %126 : vector<8x128xf32>
    %c0_93 = arith.constant 0 : index
    %c0_94 = arith.constant 0 : index
    %128 = vector.load %arg5[%c0_93, %c0_94] : memref<8x128xf32, #tpu.memory_space<vmem>>, vector<8x128xf32>
    tpu.vector_store %arg5[%c0_93, %c0_94], %127 {strides = array<i32>} : memref<8x128xf32, #tpu.memory_space<vmem>>, vector<8x128xf32>,
    return
  }
  func.func @transform_0(%arg0: i32, %arg1: memref<8x4xi32, #tpu.memory_space<smem>>) -> (i32, i32) {
    %c0_i32 = arith.constant 0 : i32
    %c0_i32_0 = arith.constant 0 : i32
    %c0_i32_1 = arith.constant 0 : i32
    return %c0_i32, %c0_i32_0 : i32, i32
  }
  func.func @transform_1(%arg0: i32, %arg1: memref<8x4xi32, #tpu.memory_space<smem>>) -> (i32, i32) {
    %c0_i32 = arith.constant 0 : i32
    %c0_i32_0 = arith.constant 0 : i32
    return %arg0, %c0_i32 : i32, i32
  }
  func.func @transform_2(%arg0: i32, %arg1: memref<8x4xi32, #tpu.memory_space<smem>>) -> (i32, i32) {
    %c0_i32 = arith.constant 0 : i32
    %c0_i32_0 = arith.constant 0 : i32
    return %c0_i32, %arg0 : i32, i32
  }
  func.func @transform_3(%arg0: i32, %arg1: memref<8x4xi32, #tpu.memory_space<smem>>) -> (i32, i32) {
    %c0_i32 = arith.constant 0 : i32
    %c0_i32_0 = arith.constant 0 : i32
    return %c0_i32, %arg0 : i32, i32
  }
}

</mosaic_0001>

<bundles_post_ra>
// kernel: tpu_custom_call.1
= control target key start
LH: loop header
LB: loop body
LE: loop exit
PB: predicated region body
PF: predicated region fallthrough
CT: control target
= control target key end

     0   :  { %s676_s0 = inlined_call_operand.vmem [shape: s32[8,4], index: 0, kind: input, shape index: {}]   ;;  %s677_s1 = inlined_call_operand.hbm [shape: f32[128,128], index: 1, kind: input, shape index: {}]   ;;  %s678_s2 = inlined_call_operand.hbm [shape: f32[128,128], index: 2, kind: input, shape index: {}]   ;;  %s679_s3 = inlined_call_operand.vmem [shape: f32[1,128], index: 3, kind: input, shape index: {}]   ;;  %s680_s4 = inlined_call_operand.hbm [shape: f32[8,128], index: 4, kind: output, shape index: {}]  }
   0x1   :  { %s9_s17 = sshll.u32 %s676_s0, 4  ;;  %s10_s17 = int_to_ptr.vmem [resolvable:$true] %s9_s17 }
   0x2   :  { %s440_s18 = scalar_lea.vmem %s10_s17, 128  ;;  %p445_p1 = scmp.lt.s32.totalorder %s10_s17, %s10_s17 }
   0x3   :  { %p441_p0 = scmp.ne.s32.totalorder %s10_s17, %s440_s18  ;;  %p446_p2 = scmp.lt.s32.totalorder %s440_s18, %s440_s18 }
   0x5   :  { %p447_p3 = por %p446_p2, %p445_p1 }
   0x7   :  { %p448_p4 = pnand %p447_p3, %p441_p0 }
   0x9   :  { %451 = shalt.err (!%p448_p4)  }
   0xa   :  { %s520_s19 = smov [#allocation3]  }
   0xb   :  { %12 = dma.vmem_to_smem %s10_s17, 128, %s520_s19, [#allocation2] }
   0xc   :  { %512 = dma.done.wait [#allocation2], 128 }
   0xd   :  { %513 = vsyncadd [#allocation2], 4294967168 }
   0xe   :  { %14 = sfence }
   0xf   :  { %15 = vsyncpa [#allocation5], 0 }
  0x10   :  { %16 = vsyncpa [#allocation8], 0 }
  0x11   :  { %17 = vsyncpa [#allocation6], 0  ;;  %s521_s20 = smov [#allocation4]  }
  0x12   :  { %s23_s21 = sshll.u32 %s521_s20, 4  ;;  %s24_s21 = int_to_ptr.vmem [resolvable:$true] %s23_s21 }
  0x13   :  { %s460_s0 = scalar_lea.vmem %s24_s21, 2048  ;;  %p465_p6 = scmp.lt.s32.totalorder %s24_s21, %s24_s21 }
  0x14   :  { %p461_p5 = scmp.ne.s32.totalorder %s24_s21, %s460_s0  ;;  %p466_p7 = scmp.lt.s32.totalorder %s460_s0, %s460_s0 }
  0x16   :  { %p467_p8 = por %p466_p7, %p465_p6 }
  0x18   :  { %p468_p9 = pnand %p467_p8, %p461_p5 }
  0x1a   :  { %471 = shalt.err (!%p468_p9)
}
  0x1b   :  { %s522_s22 = smov 128   ;;  %s523_s23 = smov 8  }
  0x1c   :  { %29 = dma.hbm_to_vmem [thread:$0]  %s677_s1, 2048, %s24_s21, [#allocation5], %s522_s22, %s522_s22, %s523_s23  }
  0x1d   :  { %s524_s26 = smov [#allocation7]  }
  0x1e   :  { %s35_s27 = sshll.u32 %s524_s26, 4  ;;  %s36_s27 = int_to_ptr.vmem [resolvable:$true] %s35_s27 }
  0x1f   :  { %s480_s28 = scalar_lea.vmem %s36_s27, 2048  ;;  %p485_p11 = scmp.lt.s32.totalorder %s36_s27, %s36_s27 }
  0x20   :  { %p481_p10 = scmp.ne.s32.totalorder %s36_s27, %s480_s28  ;;  %p486_p12 = scmp.lt.s32.totalorder %s480_s28, %s480_s28 }
  0x22   :  { %p487_p13 = por %p486_p12, %p485_p11 }
  0x24   :  { %p488_p0 = pnand %p487_p13, %p481_p10 }
  0x26   :  { %491 = shalt.err (!%p488_p0)
}
  0x27   :  { %41 = dma.hbm_to_vmem [thread:$0]  %s678_s2, 2048, %s36_s27, [#allocation8], %s522_s22, %s522_s22, %s523_s23  }
  0x28   :  { %514 = dma.done.wait [#allocation5], 2048  }
  0x29   :  { %515 = vsyncadd [#allocation5], 4294965248 }
  0x2a   :  { %516 = dma.done.wait [#allocation8], 2048  }
  0x2b   :  { %517 = vsyncadd [#allocation8], 4294965248  ;;  %v525_v0 = vmov 0.0   ;;  %vm526_vm0 = vmmov 0   ;;  %v221_v1 = vld [vmem:[#allocation7 + $0x78] sm:$0xff]  ;;  %s564_s1 = sld [smem:[#allocation3]] }
  0x2c   :  { %397 = vmatprep.subr.mxu0 %v525_v0  ;;  %429 = vmatprep.mubr.msk.f32.mxu0 %vm526_vm0, %v525_v0  ;;  %s566_s5 = sld [smem:[#allocation3 + $0x1]]  ;;  %v220_v2 = vld [vmem:[#allocation7 + $0x70] sm:$0xff]  ;;  %v219_v3 = vld [vmem:[#allocation7 + $0x68] sm:$0xff]  ;;  %v218_v4 = vld [vmem:[#allocation7 + $0x60] sm:$0xff]  ;;  %vm191_vm1 = vcmask 1040384   ;;  %vm193_vm2 = vcmask 1041408  }
  0x2d   :  { %398 = vmatpush3.xpose.msra.mxu0 %v221_v1  ;;  %s569_s2 = sld [smem:[#allocation3 + $0x2]]  ;;  %v217_v5 = vld [vmem:[#allocation7 + $0x58] sm:$0xff]  ;;  %v216_v6 = vld [vmem:[#allocation7 + $0x50] sm:$0xff]  ;;  %v215_v10 = vld [vmem:[#allocation7 + $0x48] sm:$0xff]  ;;  %vm195_vm3 = vcmask 1042432   ;;  %vm197_vm4 = vcmask 1043456  }
  0x2e   :  { %399 = vmatprep.subr.mxu0 %v525_v0  ;;  %s571_s6 = sld [smem:[#allocation3 + $0x3]]  ;;  %v214_v18 = vld [vmem:[#allocation7 + $0x40] sm:$0xff]  ;;  %v213_v28 = vld [vmem:[#allocation7 + $0x38] sm:$0xff]  ;;  %v212_v38 = vld [vmem:[#allocation7 + $0x30] sm:$0xff]  ;;  %vm199_vm5 = vcmask 1044480   ;;  %vm201_vm6 = vcmask 1045504  }
  0x2f   :  { %s351_s7 = sld [smem:[#allocation3 + $0x80]]  ;;  %v211_v52 = vld [vmem:[#allocation7 + $0x28] sm:$0xff]  ;;  %v210_v1 = vld [vmem:[#allocation7 + $0x20] sm:$0xff]  ;;  %vm203_vm7 = vcmask 1046528  }
  0x30   :  { %s352_s8 = sld [smem:[#allocation3 + $0x81]] }
  0x31   :  { %400 = vmatpush3.xpose.msra.mxu0 %v220_v2  ;;  %s574_s9 = sld [smem:[#allocation3 + $0x82]]  ;;  %s51_s27 = scalar_lea.vmem [#allocation4], %s564_s1 }
  0x32   :  { %401 = vmatprep.subr.mxu0 %v525_v0  ;;  %s576_s10 = sld [smem:[#allocation3 + $0x83]]  ;;  %v52_v11 = vld [vmem:[%s51_s27] sm:$0x1] }
  0x33   :  { %s578_s11 = sld [smem:[#allocation3 + $0x100]] }
  0x34   :  { %s580_s12 = sld [smem:[#allocation3 + $0x101]] }
  0x35   :  { %402 = vmatpush3.xpose.msra.mxu0 %v219_v3  ;;  %s583_s13 = sld [smem:[#allocation3 + $0x102]]  ;;  %s66_s21 = scalar_lea.vmem [#allocation4], %s351_s7 }
  0x36   :  { %403 = vmatprep.subr.mxu0 %v525_v0  ;;  %s585_s14 = sld [smem:[#allocation3 + $0x103]]  ;;  %v67_v7 = vld [vmem:[%s66_s21] sm:$0x1]  ;;  %s69_s22 = scalar_lea.vmem [#allocation4], %s352_s8 }
  0x37   :  { %s587_s15 = sld [smem:[#allocation3 + $0x180]]  ;;  %v70_v8 = vld [vmem:[%s69_s22] sm:$0x1]  ;;  %s73_s25 = scalar_lea.vmem [#allocation4], %s574_s9 }
  0x38   :  { %s589_s16 = sld [smem:[#allocation3 + $0x181]]  ;;  %v74_v9 = vld [vmem:[%s73_s25] sm:$0x1]  ;;  %v71_v12 = vadd.f32 %v70_v8, %v67_v7  ;;  %s54_s8 = scalar_lea.vmem [#allocation4], %s566_s5 }
  0x39   :  { %404 = vmatpush3.xpose.msra.mxu0 %v218_v4  ;;  %s592_s17 = sld [smem:[#allocation3 + $0x182]]  ;;  %s81_s28 = scalar_lea.vmem [#allocation4], %s578_s11  ;;  %v55_v15 = vld [vmem:[%s54_s8] sm:$0x1] }
  0x3a   :  { %405 = vmatprep.subr.mxu0 %v525_v0  ;;  %s594_s18 = sld [smem:[#allocation3 + $0x183]]  ;;  %v82_v13 = vld [vmem:[%s81_s28] sm:$0x1]  ;;  %s84_s30 = scalar_lea.vmem [#allocation4], %s580_s12  ;;  %v75_v19 = vadd.f32 %v74_v9, %v71_v12  ;;  %v56_v22 = vadd.f32 %v55_v15, %v52_v11 }
  0x3b   :  { %s596_s19 = sld [smem:[#allocation3 + $0x200]]  ;;  %v85_v14 = vld [vmem:[%s84_s30] sm:$0x1]  ;;  %s77_s21 = scalar_lea.vmem [#allocation4], %s576_s10 }
  0x3c   :  { %s598_s20 = sld [smem:[#allocation3 + $0x201]]  ;;  %v78_v16 = vld [vmem:[%s77_s21] sm:$0x1]  ;;  %v86_v20 = vadd.f32 %v85_v14, %v82_v13  ;;  %s88_s10 = scalar_lea.vmem [#allocation4], %s583_s13 }
  0x3d   :  { %406 = vmatpush3.xpose.msra.mxu0 %v217_v5  ;;  %s601_s0 = sld [smem:[#allocation3 + $0x202]]  ;;  %s96_s1 = scalar_lea.vmem [#allocation4], %s587_s15  ;;  %v89_v23 = vld [vmem:[%s88_s10] sm:$0x1]  ;;  %v79_v30 = vadd.f32 %v78_v16, %v75_v19  ;;  %v208_v16 = vld [vmem:[#allocation7 + $0x10] sm:$0xff] }
  0x3e   :  { %407 = vmatprep.subr.mxu0 %v525_v0  ;;  %s603_s23 = sld [smem:[#allocation3 + $0x203]]  ;;  %v97_v17 = vld [vmem:[%s96_s1] sm:$0x1]  ;;  %s99_s5 = scalar_lea.vmem [#allocation4], %s589_s16  ;;  %v90_v31 = vadd.f32 %v89_v23, %v86_v20  ;;  %v207_v20 = vld [vmem:[#allocation7 + $0x8] sm:$0xff] }
  0x3f   :  { %s605_s24 = sld [smem:[#allocation3 + $0x280]]  ;;  %v100_v21 = vld [vmem:[%s99_s5] sm:$0x1]  ;;  %s58_s15 = scalar_lea.vmem [#allocation4], %s569_s2  ;;  %v171_v43 = vrot.slane %v79_v30, 7 }
  0x40   :  { %s608_s26 = sld [smem:[#allocation3 + $0x281]]  ;;  %v59_v24 = vld [vmem:[%s58_s15] sm:$0x1]  ;;  %v101_v25 = vadd.f32 %v100_v21, %v97_v17  ;;  %s62_s13 = scalar_lea.vmem [#allocation4], %s571_s6 }
  0x41   :  { %408 = vmatpush3.xpose.msra.mxu0 %v216_v6  ;;  %s613_s29 = sld [smem:[#allocation3 + $0x282]]  ;;  %s111_s27 = scalar_lea.vmem [#allocation4], %s596_s19  ;;  %v63_v29 = vld [vmem:[%s62_s13] sm:$0x1]  ;;  %v60_v33 = vadd.f32 %v59_v24, %v56_v22 }
  0x42   :  { %409 = vmatprep.subr.mxu0 %v525_v0  ;;  %s616_s7 = sld [smem:[#allocation3 + $0x300]]  ;;  %v112_v26 = vld [vmem:[%s111_s27] sm:$0x1]  ;;  %s114_s16 = scalar_lea.vmem [#allocation4], %s598_s20 }
  0x43   :  { %s619_s9 = sld [smem:[#allocation3 + $0x301]]  ;;  %v115_v27 = vld [vmem:[%s114_s16] sm:$0x1]  ;;  %s103_s2 = scalar_lea.vmem [#allocation4], %s592_s17  ;;  %v64_v44 = vadd.f32 %v63_v29, %v60_v33 }
  0x44   :  { %s623_s11 = sld [smem:[#allocation3 + $0x283]]  ;;  %v104_v32 = vld [vmem:[%s103_s2] sm:$0x1]  ;;  %s92_s19 = scalar_lea.vmem [#allocation4], %s585_s14  ;;  %v116_v35 = vadd.f32 %v115_v27, %v112_v26 }
  0x45   :  { %410 = vmatpush3.xpose.msra.mxu0 %v215_v10  ;;  %s627_s12 = sld [smem:[#allocation3 + $0x380]]  ;;  %v93_v34 = vld [vmem:[%s92_s19] sm:$0x1]  ;;  %s126_s30 = scalar_lea.vmem [#allocation4], %s605_s24  ;;  %v105_v39 = vadd.f32 %v104_v32, %v101_v25  ;;  %v192_v59 = vsel %vm191_vm1, %v64_v44, %v171_v43  ;;  %v209_v10 = vld [vmem:[#allocation7 + $0x18] sm:$0xff] }
  0x46   :  { %411 = vmatprep.subr.mxu0 %v525_v0  ;;  %s630_s22 = sld [smem:[#allocation3 + $0x381]]  ;;  %v127_v36 = vld [vmem:[%s126_s30] sm:$0x1]  ;;  %s129_s8 = scalar_lea.vmem [#allocation4], %s608_s26  ;;  %v94_v41 = vadd.f32 %v93_v34, %v90_v31 }
  0x47   :  { %s633_s25 = sld [smem:[#allocation3 + $0x302]]  ;;  %v130_v37 = vld [vmem:[%s129_s8] sm:$0x1]  ;;  %s118_s6 = scalar_lea.vmem [#allocation4], %s601_s0 }
  0x48   :  { %s640_s28 = sld [smem:[#allocation3 + $0x303]]  ;;  %v119_v40 = vld [vmem:[%s118_s6] sm:$0x1]  ;;  %s107_s14 = scalar_lea.vmem [#allocation4], %s594_s18  ;;  %v131_v45 = vadd.f32 %v130_v37, %v127_v36  ;;  %v174_v56 = vrot.slane %v94_v41, 6 }
  0x49   :  { %412 = vmatpush3.xpose.msra.mxu0 %v214_v18  ;;  %s643_s20 = sld [smem:[#allocation3 + $0x382]]  ;;  %v108_v42 = vld [vmem:[%s107_s14] sm:$0x1]  ;;  %s141_s24 = scalar_lea.vmem [#allocation4], %s616_s7  ;;  %v120_v48 = vadd.f32 %v119_v40, %v116_v35 }
  0x4a   :  { %413 = vmatprep.subr.mxu0 %v525_v0  ;;  %s650_s17 = sld [smem:[#allocation3 + $0x383]]  ;;  %v142_v46 = vld [vmem:[%s141_s24] sm:$0x1]  ;;  %s144_s26 = scalar_lea.vmem [#allocation4], %s619_s9  ;;  %v109_v50 = vadd.f32 %v108_v42, %v105_v39  ;;  %v194_v4 = vsel %vm193_vm2, %v192_v59, %v174_v56 }
  0x4b   :  { %v145_v47 = vld [vmem:[%s144_s26] sm:$0x1]  ;;  %s133_s0 = scalar_lea.vmem [#allocation4], %s613_s29  ;;  %s122_s18 = scalar_lea.vmem [#allocation4], %s603_s23 }
  0x4c   :  { %v134_v49 = vld [vmem:[%s133_s0] sm:$0x1]  ;;  %v146_v53 = vadd.f32 %v145_v47, %v142_v46  ;;  %s156_s21 = scalar_lea.vmem [#allocation4], %s627_s12  ;;  %s159_s7 = scalar_lea.vmem [#allocation4], %s630_s22  ;;  %v177_v63 = vrot.slane %v109_v50, 5 }
  0x4d   :  { %414 = vmatpush3.xpose.msra.mxu0 %v213_v28  ;;  %v123_v51 = vld [vmem:[%s122_s18] sm:$0x1]  ;;  %v135_v57 = vadd.f32 %v134_v49, %v131_v45  ;;  %s148_s29 = scalar_lea.vmem [#allocation4], %s633_s25  ;;  %s137_s23 = scalar_lea.vmem [#allocation4], %s623_s11 }
  0x4e   :  { %415 = vmatprep.subr.mxu0 %v525_v0  ;;  %v157_v54 = vld [vmem:[%s156_s21] sm:$0x1]  ;;  %v124_v60 = vadd.f32 %v123_v51, %v120_v48  ;;  %s152_s1 = scalar_lea.vmem [#allocation4], %s640_s28  ;;  %v196_v9 = vsel %vm195_vm3, %v194_v4, %v177_v63  ;;  %s527_s10 = smov [#allocation9]  }
  0x4f   :  { %v160_v55 = vld [vmem:[%s159_s7] sm:$0x1]  ;;  %s163_s9 = scalar_lea.vmem [#allocation4], %s643_s20  ;;  %s306_s22 = sshll.u32 %s527_s10, 4  ;;  %s307_s22 = int_to_ptr.vmem [resolvable:$true] %s306_s22 }
  0x50   :  { %v149_v58 = vld [vmem:[%s148_s29] sm:$0x1]  ;;  %v161_v62 = vadd.f32 %v160_v55, %v157_v54  ;;  %v180_v7 = vrot.slane %v124_v60, 4  ;;  %s167_s11 = scalar_lea.vmem [#allocation4], %s650_s17  ;;  %s492_s15 = scalar_lea.vmem %s307_s22, 128 }
  0x51   :  { %416 = vmatpush3.xpose.msra.mxu0 %v212_v38  ;;  %v138_v61 = vld [vmem:[%s137_s23] sm:$0x1]  ;;  %v150_v2 = vadd.f32 %v149_v58, %v146_v53  ;;  %p493_p1 = scmp.ne.s32.totalorder %s307_s22, %s492_s15  ;;  %p497_p2 = scmp.lt.s32.totalorder %s307_s22, %s307_s22 }
  0x52   :  { %417 = vmatprep.subr.mxu0 %v525_v0  ;;  %v164_v3 = vld [vmem:[%s163_s9] sm:$0x1]  ;;  %v139_v5 = vadd.f32 %v138_v61, %v135_v57  ;;  %v198_v14 = vsel %vm197_vm4, %v196_v9, %v180_v7  ;;  %p498_p3 = scmp.lt.s32.totalorder %s492_s15, %s492_s15 }
  0x53   :  { %v153_v6 = vld [vmem:[%s152_s1] sm:$0x1]  ;;  %v165_v8 = vadd.f32 %v164_v3, %v161_v62 }
  0x54   :  { %v154_v11 = vadd.f32 %v153_v6, %v150_v2  ;;  %v168_v12 = vld [vmem:[%s167_s11] sm:$0x1]  ;;  %v183_v13 = vrot.slane %v139_v5, 3  ;;  %p499_p4 = por %p498_p3, %p497_p2 }
  0x55   :  { %418 = vmatpush3.xpose.msra.mxu0 %v211_v52  ;;  %v169_v15 = vadd.f32 %v168_v12, %v165_v8  ;;  %v206_v23 = vld [vmem:[#allocation7] sm:$0xff] }
  0x56   :  { %419 = vmatprep.subr.mxu0 %v525_v0  ;;  %v186_v17 = vrot.slane %v154_v11, 2  ;;  %v200_v18 = vsel %vm199_vm5, %v198_v14, %v183_v13  ;;  %v379_v25 = vld [vmem:[%s679_s3] ss:$0 sm:$0xff]  ;;  %p500_p5 = pnand %p499_p4, %p493_p1 }
  0x57   :  { %v189_v19 = vrot.slane %v169_v15, 1 }
  0x58   :  { %v202_v21 = vsel %vm201_vm6, %v200_v18, %v186_v17 }
  0x59   :  { %420 = vmatpush3.xpose.msra.mxu0 %v210_v1  ;;  %v204_v22 = vsel %vm203_vm7, %v202_v21, %v189_v19 }
  0x5a   :  { %421 = vmatprep.subr.mxu0 %v525_v0  ;;  %v205_v24 = vmul.f32 0.25, %v204_v22 }
  0x5d   :  { %422 = vmatpush3.xpose.msra.mxu0 %v209_v10 }
  0x5e   :  { %423 = vmatprep.subr.mxu0 %v525_v0 }
  0x61   :  { %424 = vmatpush3.xpose.msra.mxu0 %v208_v16 }
  0x62   :  { %425 = vmatprep.subr.mxu0 %v525_v0 }
  0x65   :  { %426 = vmatpush3.xpose.msra.mxu0 %v207_v20 }
  0x66   :  { %427 = vmatprep.subr.mxu0 %v525_v0 }
  0x69   :  { %428 = vmatpush3.xpose.msra.mxu0 %v206_v23 }
  0x6c   :  { %430 = vmatmul.mubr.f32.vlgmr.msra.gmra.mxu0 %v205_v24 }
 0x12c   :  { %v295_v26 = vpop.f32.mrf.mxu0 }
 0x12d   :  { %v296_v27 = vadd.f32 %v379_v25, %v295_v26 }
 0x12e   :  { %v431_v28 = vpop.f32.mrf.mxu0 }
 0x12f   :  { %299 = vst [vmem:[#allocation9] sm:$0xff] %v296_v27 }
 0x130   :  { %503 = shalt.err (!%p500_p5)
}
 0x131   :  { %309 = dma.vmem_to_hbm [thread:$0]  %s307_s22, 128, %s680_s4, [#allocation6]  }
 0x132   :  { %518 = dma.done.wait [#allocation6], 128  }
 0x133   :  { %519 = vsyncadd [#allocation6], 4294967168 }
 0x134   :  { %313 = vsyncpa [#allocation5], 1 }
 0x135   :  { %314 = vsyncpa [#allocation8], 1 }
 0x136   :  { %315 = vsyncpa [#allocation6], 1 }

</bundles_post_ra>
